<compile_context>
chip_gen: v7x
topology: tpu7x:2x2x1
jax: 0.10.0
libtpu: 0.0.40
codegen_flags: <defaults>
</compile_context>

<pallas_src>
import functools

import jax
import jax.numpy as jnp
import numpy as np
from jax.experimental import pallas as pl
from jax.experimental.pallas import tpu as pltpu


# ----------------------------------------------------------------------------
# In-kernel embedding gather (per-row DMA, HBM table -> VMEM scratch)
# ----------------------------------------------------------------------------
def _gather_rows(ids_ref, table_ref, x_buf, sem, base):
    """Gather x_buf.shape[0] embedding rows (f32) from the HBM table.

    ids_ref lives in SMEM (scalar prefetch); table_ref is an HBM (ANY) ref.
    All copies signal one DMA semaphore; the drain loop waits with
    equivalently-shaped descriptors (same pattern as the paged-attention
    reference kernel).
    """
    tm = x_buf.shape[0]
    n_ids = ids_ref.shape[0]

    @pl.loop(0, tm)
    def _issue(r):
        g = jnp.minimum(base + r, n_ids - 1)          # clamp for a partial last tile
        idx = ids_ref[g]
        pltpu.make_async_copy(table_ref.at[pl.ds(idx, 1), :],
                              x_buf.at[pl.ds(r, 1), :], sem).start()

    @pl.loop(0, tm)
    def _drain(r):
        pltpu.make_async_copy(table_ref.at[pl.ds(0, 1), :],
                              x_buf.at[pl.ds(r, 1), :], sem).wait()


# ----------------------------------------------------------------------------
# Pallas kernels
# ----------------------------------------------------------------------------
def _fused_merge_kernel(ids_ref, mask_ref, paper_ref, table_ref,
                        w_enc_ref, b_enc_ref, w_proj_ref, b_proj_ref,
                        out_ref, x_buf, gsem):
    """Fused synthetic-encoder + MargeLayer for one row tile.

    x = gather(table, ids)                            (in-kernel DMA gather)
    h = tanh(x @ W_enc + b_enc) * mask                (encoder stand-in, f32)
    p = paper @ W_proj + b_proj                       (embedding_projection)
    q = h     @ W_proj + b_proj                       (same weights, as in PyTorch)
    out[:, :H] = p ; out[:, H:] = q                   (no concat temp)
    """
    tm = x_buf.shape[0]
    H = w_proj_ref.shape[1]
    base = pl.program_id(0) * tm

    # In-kernel embedding gather: removes the XLA gather temp's HBM round trip.
    # TODO(synk): double-buffer the gather across grid steps (prefetch tile i+1
    #             during tile i's compute) to fully hide per-row DMA latency.
    _gather_rows(ids_ref, table_ref, x_buf, gsem, base)

    # Encoder: bf16 MXU operands, f32 accumulate + f32 epilogue.
    x = x_buf[...].astype(jnp.bfloat16)
    h = jnp.dot(x, w_enc_ref[...], preferred_element_type=jnp.float32)
    h = jnp.tanh(h + b_enc_ref[...]) * mask_ref[...].astype(jnp.float32)

    # MargeLayer: both projections reuse embedding_projection (module behaviour).
    w = w_proj_ref[...]
    b = b_proj_ref[...]
    paper = paper_ref[...].astype(w.dtype)            # f32 -> bf16 in-vreg (free on VPU)
    p = jnp.dot(paper, w, preferred_element_type=jnp.float32) + b
    q = jnp.dot(h.astype(w.dtype), w, preferred_element_type=jnp.float32) + b
    # H is a multiple of 128 -> both half-tile stores are lane-dense unmasked vst.
    # (If H were not a multiple of 128, emit two separate (rows, H) outputs instead.)
    out_ref[:, :H] = p.astype(out_ref.dtype)
    out_ref[:, H:] = q.astype(out_ref.dtype)


def _encoder_kernel(ids_ref, mask_ref, table_ref, w_enc_ref, b_enc_ref,
                    out_ref, x_buf, gsem):
    """Encoder-only path (used when paper_embeddings is empty)."""
    tm = x_buf.shape[0]
    base = pl.program_id(0) * tm
    _gather_rows(ids_ref, table_ref, x_buf, gsem, base)
    x = x_buf[...].astype(jnp.bfloat16)
    h = jnp.dot(x, w_enc_ref[...], preferred_element_type=jnp.float32)
    out_ref[...] = (jnp.tanh(h + b_enc_ref[...])
                    * mask_ref[...].astype(jnp.float32)).astype(out_ref.dtype)


# ----------------------------------------------------------------------------
# Tiling helpers
# ----------------------------------------------------------------------------
def _round_up(n, m):
    return ((n + m - 1) // m) * m


def _pad_rows(a, padded_rows):
    pad = padded_rows - a.shape[0]
    if pad == 0:
        return a
    return jnp.pad(a, ((0, pad),) + ((0, 0),) * (a.ndim - 1))


def _vmem_plan():
    """Generation-aware (budget_bytes, vmem_limit_bytes_or_None, min_grid_tiles)."""
    kind = ""
    try:
        kind = jax.devices()[0].device_kind.lower()
    except Exception:
        pass
    if "v6" in kind or "trillium" in kind:
        # 128 MiB physical / 32 MiB scoped default: raise the limit, grow tiles.
        return 40 << 20, 64 << 20, 1
    if "v7" in kind:
        # 64 MiB physical, 2 TCs/chip: modest per-core footprint and >=2 grid
        # tiles so the "parallel" axis actually shards across both cores.
        return 22 << 20, 32 << 20, 2
    # v5e (16 MiB scoped default) and unknown chips: stay conservative.
    return 12 << 20, None, 1


def _choose_row_tile(rows, d_model, e_in, h_out, out_bytes,
                     max_rows_per_tile, vmem_budget_bytes, min_tiles):
    """Largest multiple-of-8 row tile whose full pipeline footprint fits the
    budget: resident weights (x2 buffers — constant-index blocks are still
    double-buffered by the pipeline), the gathered-x scratch, double-buffered
    mask/paper/out blocks, and the f32 intermediates (h, p, q)."""
    fixed = 2 * (d_model * d_model * 2 + d_model * 4      # W_enc / b_enc (x2 bufs)
                 + e_in * h_out * 2 + h_out * 4)           # W_proj / b_proj (x2 bufs)
    per_row = (d_model * 4                                  # gathered x scratch (f32)
               + 2 * 4                                      # mask int32 (x2 bufs)
               + 2 * e_in * 4                               # paper f32 (x2 bufs)
               + 2 * 2 * h_out * out_bytes                  # output (x2 bufs)
               + d_model * 4 + 2 * h_out * 4)               # f32 h, p, q intermediates
    avail = max(vmem_budget_bytes - fixed, 8 * per_row)
    tm = avail // per_row
    padded_rows = _round_up(rows, 8)
    tm = min(int(tm), max_rows_per_tile, padded_rows)
    if min_tiles > 1 and padded_rows >= 8 * min_tiles:
        tm = min(tm, padded_rows // min_tiles)
    return max(8, (tm // 8) * 8)


# ----------------------------------------------------------------------------
# Forward wrapper (reshape / pad / pallas_call plumbing)
# ----------------------------------------------------------------------------
def multi_document_t5_forward(params, input_ids, attention_mask, paper_embeddings,
                              *, max_rows_per_tile=1024, out_dtype=jnp.bfloat16):
    """Forward up to the merged encoder representation (concat_rep)."""
    B, S = input_ids.shape
    D = params["w_enc"].shape[1]
    H = params["w_proj"].shape[1]
    rows = B * S
    out_bytes = np.dtype(out_dtype).itemsize

    # Flattened token ids are scalar-prefetched into SMEM; the embedding table
    # stays in HBM and rows are gathered inside the kernel (no XLA gather temp).
    # NOTE: for very large rows counts, keep ids in HBM and stage per-tile.
    ids = input_ids.reshape(-1).astype(jnp.int32)                 # (rows,)
    mask = attention_mask.reshape(-1, 1).astype(jnp.int32)        # (rows, 1)
    table = params["embed_table"]                                 # (V, D) f32, stays in HBM
    # TODO(synk): accept a pre-cast bf16 embedding table (prepared once outside
    #             the jit) to halve the per-row gather bytes.

    w_enc = params["w_enc"].astype(jnp.bfloat16)
    b_enc = params["b_enc"]                      # (1, D) f32
    w_proj = params["w_proj"].astype(jnp.bfloat16)
    b_proj = params["b_proj"]                    # (1, H) f32

    merge = paper_embeddings.size > 0
    e_in = paper_embeddings.shape[-1] if merge else 0

    budget, vmem_limit, min_tiles = _vmem_plan()
    tm = _choose_row_tile(rows, D, e_in, H if merge else D // 2, out_bytes,
                          max_rows_per_tile, budget, min_tiles)

    padded_rows = _round_up(rows, 8)             # pad only for the (8,128) sublane rule
    ids = _pad_rows(ids, padded_rows)
    mask = _pad_rows(mask, padded_rows)
    n_tiles = pl.cdiv(padded_rows, tm)

    row = lambda i, ids_ref: (i, 0)      # row-tiled operands (prefetch ref unused)
    const = lambda i, ids_ref: (0, 0)    # weights / biases: VMEM-resident across the grid
    # NOTE: constant-index blocks still get the default double buffer; their 2x
    # footprint is charged to the VMEM budget above (pl.Buffered(1) would
    # reclaim half of it).
    cp_kwargs = dict(dimension_semantics=("parallel",))
    if vmem_limit is not None:
        cp_kwargs["vmem_limit_bytes"] = int(vmem_limit)
    cparams = pltpu.CompilerParams(**cp_kwargs)

    if merge:
        E = e_in
        paper = jnp.squeeze(paper_embeddings, axis=0).reshape(-1, E)  # TimeDistributed view
        paper = _pad_rows(paper.astype(jnp.float32), padded_rows)     # f32 in, bf16 cast in-kernel

        flops = int(2 * rows * D * D + 2 * 2 * rows * E * H)
        bytes_accessed = int(
            rows * (4 * D + 4 + 4 * E + 2 * H * out_bytes)
            + w_enc.size * 2 + b_enc.size * 4 + w_proj.size * 2 + b_proj.size * 4)

        out = pl.pallas_call(
            _fused_merge_kernel,
            out_shape=jax.ShapeDtypeStruct((padded_rows, 2 * H), out_dtype),
            grid_spec=pltpu.PrefetchScalarGridSpec(
                num_scalar_prefetch=1,
                grid=(n_tiles,),
                in_specs=[
                    pl.BlockSpec((tm, 1), row),           # mask (int32)
                    pl.BlockSpec((tm, E), row),           # paper (f32)
                    pl.BlockSpec(memory_space=pl.ANY),    # embedding table (HBM)
                    pl.BlockSpec((D, D), const),          # W_enc (resident)
                    pl.BlockSpec((1, D), const),          # b_enc
                    pl.BlockSpec((E, H), const),          # W_proj (resident)
                    pl.BlockSpec((1, H), const),          # b_proj
                ],
                out_specs=pl.BlockSpec((tm, 2 * H), row),
                scratch_shapes=[pltpu.VMEM((tm, D), jnp.float32),   # gathered x
                                pltpu.SemaphoreType.DMA(())],
            ),
            compiler_params=cparams,
            cost_estimate=pl.CostEstimate(flops=flops,
                                          transcendentals=int(rows * D),
                                          bytes_accessed=bytes_accessed),
        )(ids, mask, paper, table, w_enc, b_enc, w_proj, b_proj)
        return out[:rows].reshape(B, S, 2 * H)

    # paper_embeddings empty -> just the (synthetic) encoder hidden state.
    flops = int(2 * rows * D * D)
    bytes_accessed = int(rows * (4 * D + 4 + D * out_bytes)
                         + w_enc.size * 2 + b_enc.size * 4)
    hs = pl.pallas_call(
        _encoder_kernel,
        out_shape=jax.ShapeDtypeStruct((padded_rows, D), out_dtype),
        grid_spec=pltpu.PrefetchScalarGridSpec(
            num_scalar_prefetch=1,
            grid=(n_tiles,),
            in_specs=[
                pl.BlockSpec((tm, 1), row),
                pl.BlockSpec(memory_space=pl.ANY),
                pl.BlockSpec((D, D), const),
                pl.BlockSpec((1, D), const),
            ],
            out_specs=pl.BlockSpec((tm, D), row),
            scratch_shapes=[pltpu.VMEM((tm, D), jnp.float32),
                            pltpu.SemaphoreType.DMA(())],
        ),
        compiler_params=cparams,
        cost_estimate=pl.CostEstimate(flops=flops,
                                      transcendentals=int(rows * D),
                                      bytes_accessed=bytes_accessed),
    )(ids, mask, table, w_enc, b_enc)
    return hs[:rows].reshape(B, S, D)


# ----------------------------------------------------------------------------
# Deterministic parameter init (mimics nn.Linear / nn.Embedding shapes)
# ----------------------------------------------------------------------------
def init_params(key, vocab, d_model, paper_embedding_size):
    assert paper_embedding_size == d_model, (
        "MargeLayer reuses embedding_projection on the query hidden state, "
        "so paper_embedding_size must equal d_model.")
    H = d_model // 2
    k_emb, k_we, k_be, k_wp, k_bp = jax.random.split(key, 5)
    kin_enc = 1.0 / np.sqrt(d_model)
    kin_proj = 1.0 / np.sqrt(paper_embedding_size)
    return {
        "embed_table": jax.random.normal(k_emb, (vocab, d_model), jnp.float32) * 0.02,
        # synthetic-encoder dense (stand-in for the pretrained T5 encoder)
        "w_enc": jax.random.uniform(k_we, (d_model, d_model), jnp.float32,
                                    -kin_enc, kin_enc),
        "b_enc": jax.random.uniform(k_be, (1, d_model), jnp.float32,
                                    -kin_enc, kin_enc),
        # MargeLayer.embedding_projection: Linear(paper_embedding_size, d_model//2)
        # stored as (in, out); bias as (1, out)
        "w_proj": jax.random.uniform(k_wp, (paper_embedding_size, H), jnp.float32,
                                     -kin_proj, kin_proj),
        "b_proj": jax.random.uniform(k_bp, (1, H), jnp.float32,
                                     -kin_proj, kin_proj),
    }


# ----------------------------------------------------------------------------
# Pure-JAX reference (mirrors the kernel's bf16-operand / f32-accumulate math)
# ----------------------------------------------------------------------------
def reference_forward(params, input_ids, attention_mask, paper_embeddings):
    bf16 = jnp.bfloat16
    B, S = input_ids.shape
    x = params["embed_table"][input_ids.reshape(-1)].astype(bf16)
    mask = attention_mask.reshape(-1, 1).astype(jnp.float32)
    h = jnp.tanh(
        jnp.dot(x, params["w_enc"].astype(bf16), preferred_element_type=jnp.float32)
        + params["b_enc"]) * mask
    if paper_embeddings.size == 0:
        return h.reshape(B, S, -1)
    E = paper_embeddings.shape[-1]
    paper = jnp.squeeze(paper_embeddings, axis=0).reshape(-1, E).astype(bf16)
    wp = params["w_proj"].astype(bf16)
    pp = jnp.dot(paper, wp, preferred_element_type=jnp.float32) + params["b_proj"]
    pq = jnp.dot(h.astype(bf16), wp, preferred_element_type=jnp.float32) + params["b_proj"]
    H = params["w_proj"].shape[1]
    return jnp.concatenate([pp, pq], axis=-1).reshape(B, S, 2 * H)


# ----------------------------------------------------------------------------
if __name__ == "__main__":
    B, S = 2, 128          # batch, sequence length  -> 256 token rows
    VOCAB = 512
    D_MODEL = 256          # lane-aligned d_model (multiple of 128)
    PAPER_EMB = 256        # must equal d_model (module reuses embedding_projection)

    key = jax.random.PRNGKey(0)
    k_params, k_ids, k_paper = jax.random.split(key, 3)

    params = init_params(k_params, VOCAB, D_MODEL, PAPER_EMB)

    input_ids = jax.random.randint(k_ids, (B, S), 0, VOCAB, dtype=jnp.int32)
    attention_mask = jnp.ones((B, S), dtype=jnp.int32)
    paper_embeddings = jax.random.normal(k_paper, (1, B, S, PAPER_EMB), jnp.float32)

    # max_rows_per_tile=64 -> 4 row tiles: exercises the pipelined grid, the
    # in-kernel DMA gather and the megacore-parallel dimension at a small shape.
    fwd = jax.jit(functools.partial(multi_document_t5_forward, params,
                                    max_rows_per_tile=64))
    out = jax.block_until_ready(fwd(input_ids, attention_mask, paper_embeddings))

    ref = reference_forward(params, input_ids, attention_mask, paper_embeddings)
    np.testing.assert_allclose(np.asarray(jnp.asarray(out, jnp.float32)),
                               np.asarray(ref, dtype=np.float32),
                               rtol=2e-2, atol=2e-2)   # bf16 output tolerance
    assert out.shape == (B, S, D_MODEL)   # concat of two d_model//2 projections
    assert out.dtype == jnp.bfloat16

    print("KERNEL_OK")
</pallas_src>

<mosaic_0001>
module attributes {stable_mosaic.version = 11 : i64} {
  func.func @_fused_merge_kernel(%arg0: i32, %arg1: memref<256xi32, #tpu.memory_space<smem>>, %arg2: memref<64x1xi32, #tpu.memory_space<vmem>>, %arg3: memref<64x256xf32, #tpu.memory_space<vmem>>, %arg4: memref<512x256xf32, #tpu.memory_space<any>>, %arg5: memref<256x256xbf16, #tpu.memory_space<vmem>>, %arg6: memref<1x256xf32, #tpu.memory_space<vmem>>, %arg7: memref<256x128xbf16, #tpu.memory_space<vmem>>, %arg8: memref<1x128xf32, #tpu.memory_space<vmem>>, %arg9: memref<64x256xbf16, #tpu.memory_space<vmem>>, %arg10: memref<64x256xf32, #tpu.memory_space<vmem>>, %arg11: memref<!tpu.dma_semaphore, #tpu.memory_space<semaphore_mem>>) attributes {dimension_semantics = [#tpu.dimension_semantics<parallel>], iteration_bounds = array<i64: 4>, scalar_prefetch = 1 : i64, scratch_operands = 2 : i64, tpu.core_type = #tpu.core_type<tc>, window_params = [{transform_indices = @transform_0, window_bounds = array<i64: 64, 1>}, {transform_indices = @transform_1, window_bounds = array<i64: 64, 256>}, {}, {pipeline_mode = #tpu.pipeline_mode<synchronous>, transform_indices = @transform_3, window_bounds = array<i64: 256, 256>}, {pipeline_mode = #tpu.pipeline_mode<synchronous>, transform_indices = @transform_4, window_bounds = array<i64: 1, 256>}, {pipeline_mode = #tpu.pipeline_mode<synchronous>, transform_indices = @transform_5, window_bounds = array<i64: 256, 128>}, {pipeline_mode = #tpu.pipeline_mode<synchronous>, transform_indices = @transform_6, window_bounds = array<i64: 1, 128>}, {transform_indices = @transform_7, window_bounds = array<i64: 64, 256>}]} {
    %c64_i32 = arith.constant 64 : i32
    %0 = arith.muli %arg0, %c64_i32 : i32
    %c0_i32 = arith.constant 0 : i32
    %c64_i32_0 = arith.constant 64 : i32
    %1 = arith.addi %c0_i32, %c64_i32_0 : i32
    %c1_i32 = arith.constant 1 : i32
    scf.for %arg12 = %c0_i32 to %1 step %c1_i32  : i32 {
      %c1_i32_24 = arith.constant 1 : i32
      %30 = arith.muli %arg12, %c1_i32_24 : i32
      %c0_i32_25 = arith.constant 0 : i32
      %31 = arith.addi %c0_i32_25, %30 : i32
      %32 = arith.addi %0, %31 : i32
      %c255_i32 = arith.constant 255 : i32
      %33 = arith.minsi %32, %c255_i32 : i32
      %34 = arith.index_cast %33 : i32 to index
      %35 = memref.load %arg1[%34] : memref<256xi32, #tpu.memory_space<smem>>
      %c0_i32_26 = arith.constant 0 : i32
      %36 = tpu.memref_slice %arg4[%35, %c0_i32_26] : memref<512x256xf32, #tpu.memory_space<any>> -> memref<1x256xf32, #tpu.memory_space<any>>
      %c0_i32_27 = arith.constant 0 : i32
      %37 = tpu.memref_slice %arg10[%31, %c0_i32_27] : memref<64x256xf32, #tpu.memory_space<vmem>> -> memref<1x256xf32, #tpu.memory_space<vmem>>
      tpu.enqueue_dma source(%36 : memref<1x256xf32, #tpu.memory_space<any>>) target(%37 : memref<1x256xf32, #tpu.memory_space<vmem>>) target_semaphore(%arg11 : memref<!tpu.dma_semaphore, #tpu.memory_space<semaphore_mem>>)
    }
    %c64_i32_1 = arith.constant 64 : i32
    %c0_i32_2 = arith.constant 0 : i32
    %c64_i32_3 = arith.constant 64 : i32
    %2 = arith.addi %c0_i32_2, %c64_i32_3 : i32
    %c1_i32_4 = arith.constant 1 : i32
    scf.for %arg12 = %c0_i32_2 to %2 step %c1_i32_4  : i32 {
      %c1_i32_24 = arith.constant 1 : i32
      %30 = arith.muli %arg12, %c1_i32_24 : i32
      %c0_i32_25 = arith.constant 0 : i32
      %31 = arith.addi %c0_i32_25, %30 : i32
      %c0_i32_26 = arith.constant 0 : i32
      %c0_i32_27 = arith.constant 0 : i32
      %32 = tpu.memref_slice %arg4[%c0_i32_26, %c0_i32_27] : memref<512x256xf32, #tpu.memory_space<any>> -> memref<1x256xf32, #tpu.memory_space<any>>
      %c0_i32_28 = arith.constant 0 : i32
      %33 = tpu.memref_slice %arg10[%31, %c0_i32_28] : memref<64x256xf32, #tpu.memory_space<vmem>> -> memref<1x256xf32, #tpu.memory_space<vmem>>
      tpu.wait_dma2 semaphore(%arg11 : memref<!tpu.dma_semaphore, #tpu.memory_space<semaphore_mem>>) src(%32 : memref<1x256xf32, #tpu.memory_space<any>>) dst(%33 : memref<1x256xf32, #tpu.memory_space<vmem>>)
    }
    %c64_i32_5 = arith.constant 64 : i32
    %c0 = arith.constant 0 : index
    %c0_6 = arith.constant 0 : index
    %3 = vector.load %arg10[%c0, %c0_6] : memref<64x256xf32, #tpu.memory_space<vmem>>, vector<64x256xf32>
    %4 = arith.truncf %3 : vector<64x256xf32> to vector<64x256xbf16>
    %c0_7 = arith.constant 0 : index
    %c0_8 = arith.constant 0 : index
    %5 = vector.load %arg5[%c0_7, %c0_8] : memref<256x256xbf16, #tpu.memory_space<vmem>>, vector<256x256xbf16>
    %cst = arith.constant dense<0.000000e+00> : vector<64x256xf32>
    %6 = tpu.matmul %4, %5, %cst {dimension_numbers = #tpu.dot_dimension_numbers<[1], [0], [0], [1], [0, 0, 1, 1], [], []>} : vector<64x256xbf16>, vector<256x256xbf16>, vector<64x256xf32> -> vector<64x256xf32>
    %c0_9 = arith.constant 0 : index
    %c0_10 = arith.constant 0 : index
    %7 = vector.load %arg6[%c0_9, %c0_10] : memref<1x256xf32, #tpu.memory_space<vmem>>, vector<1x256xf32>
    %8 = vector.broadcast %7 : vector<1x256xf32> to vector<64x256xf32>
    %9 = arith.addf %6, %8 : vector<64x256xf32>
    %10 = math.tanh %9 : vector<64x256xf32>
    %c0_11 = arith.constant 0 : index
    %c0_12 = arith.constant 0 : index
    %11 = vector.load %arg2[%c0_11, %c0_12] : memref<64x1xi32, #tpu.memory_space<vmem>>, vector<64x1xi32>
    %12 = arith.sitofp %11 : vector<64x1xi32> to vector<64x1xf32>
    %13 = vector.broadcast %12 : vector<64x1xf32> to vector<64x256xf32>
    %14 = arith.mulf %10, %13 : vector<64x256xf32>
    %c0_13 = arith.constant 0 : index
    %c0_14 = arith.constant 0 : index
    %15 = vector.load %arg7[%c0_13, %c0_14] : memref<256x128xbf16, #tpu.memory_space<vmem>>, vector<256x128xbf16>
    %c0_15 = arith.constant 0 : index
    %c0_16 = arith.constant 0 : index
    %16 = vector.load %arg8[%c0_15, %c0_16] : memref<1x128xf32, #tpu.memory_space<vmem>>, vector<1x128xf32>
    %c0_17 = arith.constant 0 : index
    %c0_18 = arith.constant 0 : index
    %17 = vector.load %arg3[%c0_17, %c0_18] : memref<64x256xf32, #tpu.memory_space<vmem>>, vector<64x256xf32>
    %18 = arith.truncf %17 : vector<64x256xf32> to vector<64x256xbf16>
    %cst_19 = arith.constant dense<0.000000e+00> : vector<64x128xf32>
    %19 = tpu.matmul %18, %15, %cst_19 {dimension_numbers = #tpu.dot_dimension_numbers<[1], [0], [0], [1], [0, 0, 1, 1], [], []>} : vector<64x256xbf16>, vector<256x128xbf16>, vector<64x128xf32> -> vector<64x128xf32>
    %20 = vector.broadcast %16 : vector<1x128xf32> to vector<64x128xf32>
    %21 = arith.addf %19, %20 : vector<64x128xf32>
    %22 = arith.truncf %14 : vector<64x256xf32> to vector<64x256xbf16>
    %cst_20 = arith.constant dense<0.000000e+00> : vector<64x128xf32>
    %23 = tpu.matmul %22, %15, %cst_20 {dimension_numbers = #tpu.dot_dimension_numbers<[1], [0], [0], [1], [0, 0, 1, 1], [], []>} : vector<64x256xbf16>, vector<256x128xbf16>, vector<64x128xf32> -> vector<64x128xf32>
    %24 = vector.broadcast %16 : vector<1x128xf32> to vector<64x128xf32>
    %25 = arith.addf %23, %24 : vector<64x128xf32>
    %26 = arith.truncf %21 : vector<64x128xf32> to vector<64x128xbf16>
    %c0_21 = arith.constant 0 : index
    %c0_22 = arith.constant 0 : index
    %27 = vector.load %arg9[%c0_21, %c0_22] : memref<64x256xbf16, #tpu.memory_space<vmem>>, vector<64x128xbf16>
    tpu.vector_store %arg9[%c0_21, %c0_22], %26 {strides = array<i32>} : memref<64x256xbf16, #tpu.memory_space<vmem>>, vector<64x128xbf16>,
    %28 = arith.truncf %25 : vector<64x128xf32> to vector<64x128xbf16>
    %c0_23 = arith.constant 0 : index
    %c128 = arith.constant 128 : index
    %29 = vector.load %arg9[%c0_23, %c128] : memref<64x256xbf16, #tpu.memory_space<vmem>>, vector<64x128xbf16>
    tpu.vector_store %arg9[%c0_23, %c128], %28 {strides = array<i32>} : memref<64x256xbf16, #tpu.memory_space<vmem>>, vector<64x128xbf16>,
    return
  }
  func.func @transform_0(%arg0: i32, %arg1: memref<256xi32, #tpu.memory_space<smem>>) -> (i32, i32) {
    %c0_i32 = arith.constant 0 : i32
    %c0_i32_0 = arith.constant 0 : i32
    return %arg0, %c0_i32 : i32, i32
  }
  func.func @transform_1(%arg0: i32, %arg1: memref<256xi32, #tpu.memory_space<smem>>) -> (i32, i32) {
    %c0_i32 = arith.constant 0 : i32
    %c0_i32_0 = arith.constant 0 : i32
    return %arg0, %c0_i32 : i32, i32
  }
  func.func @transform_3(%arg0: i32, %arg1: memref<256xi32, #tpu.memory_space<smem>>) -> (i32, i32) {
    %c0_i32 = arith.constant 0 : i32
    %c0_i32_0 = arith.constant 0 : i32
    %c0_i32_1 = arith.constant 0 : i32
    return %c0_i32, %c0_i32_0 : i32, i32
  }
  func.func @transform_4(%arg0: i32, %arg1: memref<256xi32, #tpu.memory_space<smem>>) -> (i32, i32) {
    %c0_i32 = arith.constant 0 : i32
    %c0_i32_0 = arith.constant 0 : i32
    %c0_i32_1 = arith.constant 0 : i32
    return %c0_i32, %c0_i32_0 : i32, i32
  }
  func.func @transform_5(%arg0: i32, %arg1: memref<256xi32, #tpu.memory_space<smem>>) -> (i32, i32) {
    %c0_i32 = arith.constant 0 : i32
    %c0_i32_0 = arith.constant 0 : i32
    %c0_i32_1 = arith.constant 0 : i32
    return %c0_i32, %c0_i32_0 : i32, i32
  }
  func.func @transform_6(%arg0: i32, %arg1: memref<256xi32, #tpu.memory_space<smem>>) -> (i32, i32) {
    %c0_i32 = arith.constant 0 : i32
    %c0_i32_0 = arith.constant 0 : i32
    %c0_i32_1 = arith.constant 0 : i32
    return %c0_i32, %c0_i32_0 : i32, i32
  }
  func.func @transform_7(%arg0: i32, %arg1: memref<256xi32, #tpu.memory_space<smem>>) -> (i32, i32) {
    %c0_i32 = arith.constant 0 : i32
    %c0_i32_0 = arith.constant 0 : i32
    return %arg0, %c0_i32 : i32, i32
  }
}

</mosaic_0001>

<bundles_post_ra>
// kernel: multi_document_t5_forward.1
= control target key start
LH: loop header
LB: loop body
LE: loop exit
PB: predicated region body
PF: predicated region fallthrough
CT: control target
= control target key end

     0   :  { %s2218_s0 = inlined_call_operand.vmem [shape: s32[256], index: 0, kind: input, shape index: {}]   ;;  %s2219_s1 = inlined_call_operand.vmem [shape: s32[256,1], index: 1, kind: input, shape index: {}]   ;;  %s2220_s2 = inlined_call_operand.vmem [shape: f32[256,256], index: 2, kind: input, shape index: {}]   ;;  %s2221_s3 = inlined_call_operand.hbm [shape: f32[512,256], index: 3, kind: input, shape index: {}]   ;;  %s2222_s4 = inlined_call_operand.vmem [shape: bf16[256,256], index: 4, kind: input, shape index: {}]   ;;  %s2223_s5 = inlined_call_operand.vmem [shape: f32[1,256], index: 5, kind: input, shape index: {}]   ;;  %s2224_s6 = inlined_call_operand.hbm [shape: bf16[256,128], index: 6, kind: input, shape index: {}]   ;;  %s2225_s7 = inlined_call_operand.vmem [shape: f32[1,128], index: 7, kind: input, shape index: {}]   ;;  %s2226_s8 = inlined_call_operand.hbm [shape: bf16[256,256], index: 8, kind: output, shape index: {}]  }
   0x1   :  { %2236 = sst [smem:[#allocation20_spill]] %s2219_s1  ;;  %s13_s29 = sshll.u32 %s2218_s0, 4  ;;  %s14_s29 = int_to_ptr.vmem [resolvable:$true] %s13_s29 }
   0x2   :  { %2237 = sst [smem:[#allocation21_spill]] %s2220_s2  ;;  %s1587_s30 = scalar_lea.vmem %s14_s29, 32 }
   0x3   :  { %2238 = sst [smem:[#allocation22_spill]] %s2224_s6  ;;  %p1588_p0 = scmp.ne.s32.totalorder %s14_s29, %s1587_s30 }
   0x4   :  { %p1592_p1 = scmp.lt.s32.totalorder %s14_s29, %s14_s29  ;;  %p1593_p2 = scmp.lt.s32.totalorder %s1587_s30, %s1587_s30 }
   0x6   :  { %p1594_p3 = por %p1593_p2, %p1592_p1 }
   0x8   :  { %p1595_p4 = pnand %p1594_p3, %p1588_p0 }
   0xa   :  { %1598 = shalt.err (!%p1595_p4)  }
   0xb   :  { %s1739_s9 = smov [#allocation5]  }
   0xc   :  { %16 = dma.vmem_to_smem %s14_s29, 32, %s1739_s9, [#allocation4] }
   0xd   :  { %1703 = dma.done.wait [#allocation4], 32 }
   0xe   :  { %1704 = vsyncadd [#allocation4], 4294967264 }
   0xf   :  { %18 = sfence }
  0x10   :  { %19 = vsyncpa [#allocation7], 0 }
  0x11   :  { %20 = vsyncpa [#allocation8], 0 }
  0x12   :  { %22 = vsyncpa [#allocation8 + $0x1], 0  ;;  %s1798_s10 = smov 0   ;;  %s1800_s11 = smov 0  }
  0x13   :  { %s1802_s0 = smov 0   ;;  %s1804_s12 = smov 0  }
  0x14 LB: > { %2239 = sst [smem:[#allocation15_spill]] %s1717_s10  ;;  %s1819_s13 = sadd.s32 4294967295, %s1729_s12   ;;  %s1729_s12 = sphi %s1804_s12, %s2260_s12   ;;  %s1725_s0 = sphi %s1802_s0, %s2262_s0   ;;  %s1721_s11 = sphi %s1800_s11, %s2264_s11   ;;  %s1717_s10 = sphi %s1798_s10, %s2263_s10  }
  0x15   : > { %2240 = sst [smem:[#allocation16_spill]] %s1725_s0  ;;  %s1228_s14 = sadd.s32 4294967294, %s1729_s12  }
  0x16   : > { %s1823_s15 = sadd.s32 1, %s1729_s12   ;;  %s171_s16 = sadd.s32 1, %s1725_s0 }
  0x17   : > { %2241 = sst [smem:[#allocation17_spill]] %s1823_s15  ;;  %s168_s17 = ssub.s32 %s1729_s12, %s1823_s15 }
  0x18   : > { %p181_p5 = scmp.ne.s32.totalorder %s1725_s0, %s1721_s11  ;;  %p169_p6 = scmp.eq.s32.totalorder %s168_s17, 0 }
  0x19   : > { %p182_p7 = scmp.eq.s32.totalorder %s1819_s13, 3  ;;  %p187_p8 = scmp.ne.s32.totalorder %s1721_s11, %s1717_s10 }
  0x1a   : > { %p188_p9 = scmp.eq.s32.totalorder %s1228_s14, 3  ;;  %p1229_p12 = scmp.ge.s32.totalorder %s1729_s12, 1 }
  0x1b   : > { %s1834_s18 = scalar_select %p169_p6, %s1725_s0, %s171_s16  }
  0x1c   : > { %p1836_p10 = por %p182_p7, %p181_p5  ;;  %p1840_p11 = por %p188_p9, %p187_p8 }
  0x1d   : > { %2242 = sst [smem:[#allocation18_spill]] %s1834_s18  ;;  %p195_p13 = scmp.lt.s32.totalorder %s1729_s12, 5 }
  0x1e   : > { %s2243_s19 = scalar_select %p1836_p10, 1, 0 }
  0x1f   : > { %s2244_s20 = scalar_select %p1840_p11, 1, 0 }
  0x20   : > { %p2227_p0 = scmp.eq.s32.totalorder %s1819_s13, 0  ;;  %p1847_p1 = pnand %p1229_p12, %p195_p13 }
  0x21   : > { %2245 = sst [smem:[#allocation19_spill]] %s2244_s20  ;;  %s1740_s22 = smov [#allocation6]  }
  0x22   : > { %s2246_s21 = scalar_select %p1847_p1, 1, 0 }
  0x23   : > { %s213_s23 = sshll.u32 %s1740_s22, 4  ;;  %p1421_p2 = pneg %p1847_p1  ;;  %s214_s23 = int_to_ptr.vmem [resolvable:$true] %s213_s23 }
  0x24   : > { %s2248_s6 = sld [smem:[#allocation22_spill]] }
  0x25   : > { %p1855_p3 = pnand %p2227_p0, %p1421_p2 }
  0x27   : > { %p1601_p5 = pneg %p1855_p3 }
  0x2a   : > { %s1599_s27 = scalar_lea.hbm %s2248_s6, 2048 }
  0x2b   : > { %p1600_p4 = scmp.ne.s32.totalorder %s2248_s6, %s1599_s27  ;;  %p1606_p8 = scmp.lt.u32.totalorder %s1599_s27, %s2248_s6 }
  0x2d   : > { %p1602_p6 = pnand %p1601_p5, %p1600_p4 }
  0x2f   : > { %p1603_p7 = pneg %p1602_p6 }
  0x31   : > { %p1608_p9 = pnand %p1606_p8, %p1603_p7 }
  0x33   : > { %1611 = shalt.err (!%p1608_p9)
}
  0x34   : > { %s1612_s14 = scalar_lea.vmem %s214_s23, 2048  ;;  %p1620_p0 = scmp.lt.s32.totalorder %s214_s23, %s214_s23 }
  0x35   : > { %p1613_p12 = scmp.ne.s32.totalorder %s214_s23, %s1612_s14  ;;  %p1621_p11 = scmp.lt.s32.totalorder %s1612_s14, %s1612_s14 }
  0x37   : > { %p1615_p13 = pnand %p1613_p12, %p1601_p5  ;;  %p1622_p10 = por %p1621_p11, %p1620_p0 }
  0x39   : > { %p1616_p2 = pneg %p1615_p13 }
  0x3b   : > { %p1623_p1 = pnand %p1622_p10, %p1616_p2 }
  0x3d   : > { %1626 = shalt.err (!%p1623_p1)
}
  0x3e   : > { %s1741_s16 = smov 64   ;;  %s1742_s17 = smov 4  }
  0x3f   : > { %1424 = dma.hbm_to_vmem [thread:$0]  (!%p1855_p3), %s2248_s6, 2048, %s214_s23, [#allocation7], %s1741_s16, %s1741_s16, %s1742_s17  }
  0x40   : > { %p2249_p4 = scmp.ne.s32.totalorder %s2246_s21, 0 }
  0x41   : > { %p2250_p6 = scmp.eq.s32.totalorder (!%p2249_p4), %s1819_s13, 0 }
  0x42   : > { %251 = sbr.rel (%p2249_p4) target bundleno = 693 (0x2b5), region = 44 }
  0x49   : > { %1706 = dma.done.wait (%p2250_p6), [#allocation7], 2048   ;;  %p2251_p5 = pmov %p2250_p6 }
  0x4a   : > { %s2230_s26 = sand.u32 1, %s1721_s11   ;;  %s1235_s27 = sshll.u32 %s1819_s13, 3 }
  0x4b   : > { %1708 = vsyncadd (%p2251_p5), [#allocation7], 4294965248  ;;  %s1234_s24 = sshll.u32 %s2230_s26, 6  ;;  %p288_p10 = scmp.lt.s32.totalorder %s1235_s27, 31 }
  0x4c   : > { %s2252_s1 = sld [smem:[#allocation20_spill]]  ;;  %s2253_s2 = sld [smem:[#allocation21_spill]] }
  0x4d   : > { %s2266_s27 = smov (!%p288_p10, %s1235_s27), 31  ;;  %s1896_s22 = scalar_lea.vmem [#allocation9], %s1234_s24 }
  0x4e   : > { %s1236_s23 = sshll.u32 %s2266_s27, 3  ;;  %s1316_s21 = sshll.u32 %s2266_s27, 4 }
  0x4f   : > { %s1898_s25 = smov 0  }
  0x52   : > { %s1889_s9 = scalar_lea.vmem %s2252_s1, %s1236_s23  ;;  %s1894_s17 = scalar_lea.vmem %s2253_s2, %s1316_s21 }
  0x53 LB: >> { %s2254_s28 = sshll.u32 %s1819_s13, 6  ;;  %s319_s23 = sshrl.u32 %s1733_s25, 3  ;;  %s1733_s25 = sphi %s1898_s25, %s308_s25  }
  0x54   : >> { %s309_s27 = sadd.s32 %s1733_s25, %s2254_s28  ;;  %s320_s29 = sand.u32 7, %s1733_s25  }
  0x55   : >> { %p310_p11 = scmp.lt.s32.totalorder %s309_s27, 255  ;;  %s1243_s21 = sshll.u32 %s319_s23, 4 }
  0x56   : >> { %s322_s24 = sadd.s32 %s1243_s21, %s320_s29  ;;  %s1629_s29 = scalar_lea.hbm %s2221_s3, 16384 }
  0x57   : >> { %s2268_s27 = smov (!%p310_p11, %s309_s27), 255  ;;  %s323_s14 = scalar_lea.vmem [#allocation2], %s322_s24 }
  0x58   : >> { %s312_s30 = sld [smem:[#allocation5 + %s2268_s27]]  ;;  %s325_s16 = sshll.u32 %s323_s14, 4  ;;  %s1908_s16 = int_to_ptr.vmem [resolvable:$true] %s325_s16 }
  0x5e   : >> { %s313_s26 = sshrl.u32 %s312_s30, 3  ;;  %s314_s1 = sand.u32 7, %s312_s30  }
  0x5f   : >> { %s1241_s2 = sshll.u32 %s313_s26, 4 }
  0x60   : >> { %s316_s6 = sadd.s32 %s1241_s2, %s314_s1 }
  0x61   : >> { %s1242_s18 = sshll.u32 %s316_s6, 4 }
  0x62   : >> { %s318_s28 = scalar_lea.hbm %s2221_s3, %s1242_s18 }
  0x63   : >> { %s1627_s20 = scalar_lea.hbm %s318_s28, 32  ;;  %p1630_p1 = scmp.lt.u32.totalorder %s318_s28, %s2221_s3 }
  0x64   : >> { %p1628_p0 = scmp.ne.s32.totalorder %s318_s28, %s1627_s20  ;;  %p1631_p3 = scmp.lt.u32.totalorder %s1629_s29, %s1627_s20 }
  0x65   : >> { %p1633_p8 = scmp.lt.u32.totalorder %s1627_s20, %s318_s28 }
  0x66   : >> { %p1632_p7 = por %p1631_p3, %p1630_p1 }
  0x68   : >> { %p1634_p9 = por %p1633_p8, %p1632_p7 }
  0x6a   : >> { %p1635_p12 = pnand %p1634_p9, %p1628_p0 }
  0x6c   : >> { %1638 = shalt.err (!%p1635_p12)  }
  0x6d   : >> { %s1639_s1 = scalar_lea.vmem %s1908_s16, 32  ;;  %s1743_s2 = smov [#allocation2]  }
  0x6e   : >> { %p1640_p13 = scmp.ne.s32.totalorder %s1908_s16, %s1639_s1  ;;  %s1641_s6 = sshll.u32 %s1743_s2, 4  ;;  %s1642_s6 = int_to_ptr.vmem [resolvable:$false] %s1641_s6 }
  0x6f   : >> { %s1643_s10 = scalar_lea.vmem %s1642_s6, 2048  ;;  %p1644_p2 = scmp.lt.s32.totalorder %s1908_s16, %s1642_s6 }
  0x70   : >> { %p1645_p4 = scmp.lt.s32.totalorder %s1643_s10, %s1639_s1 }
  0x72   : >> { %p1646_p6 = por %p1645_p4, %p1644_p2 }
  0x74   : >> { %p1647_p5 = pnand %p1646_p6, %p1640_p13 }
  0x76   : >> { %1650 = shalt.err (!%p1647_p5)  }
  0x77   : >> { %s1744_s0 = smov 128   ;;  %s1745_s15 = smov 1  }
  0x78   : >> { %328 = dma.hbm_to_vmem [thread:$0]  %s318_s28, 32, %s1908_s16, [#allocation3], %s1744_s0, %s1744_s0, %s1745_s15 }
  0x79   : >> { %s308_s25 = sadd.s32 1, %s1733_s25  }
  0x7a   : >> { %p305_p10 = scmp.ge.s32.totalorder %s308_s25, 64  }
  0x7b   : > { %s1735_s18 = smov (%p305_p10), 0  }
  0x7c   : > { %307 = sbr.rel (!%p305_p10) target bundleno = 83 (0x53), region = 103 }
  0x83 LB: >> { %1709 = dma.done.wait [#allocation3], 32  ;;  %s1737_s18 = sphi %s1735_s18, %s334_s18  }
  0x84   : >> { %1710 = vsyncadd [#allocation3], 4294967264  ;;  %s334_s18 = sadd.s32 1, %s1737_s18  }
  0x85   : >> { %p331_p11 = scmp.ge.s32.totalorder %s334_s18, 64  }
  0x86   : > { %v1491_v0 = vld [vmem:[%s2222_s4 + $0x4] ss:$8 sps:$4 sm:$0xff] (%p331_p11)   ;;  %v1493_v1 = vld [vmem:[%s2222_s4] ss:$8 sps:$4 sm:$0xff] (%p331_p11)   ;;  %v1746_v2 = vmov (%p331_p11), 0   ;;  %v341_v15 = vld [vmem:[#allocation2 + $0x18] sm:$0xff] (%p331_p11) }
  0x87   : > { %333 = sbr.rel (!%p331_p11) target bundleno = 131 (0x83), region = 114  ;;  %1489 = vset.pattern.permute.xlu0 (%p331_p11), %v1746_v2  ;;  %1490 = vset.pattern.permute.xlu1 (%p331_p11), %v1746_v2  ;;  %v1494_v3 = vld [vmem:[%s2222_s4 + $0x14] ss:$8 sps:$4 sm:$0xff] (%p331_p11)   ;;  %v1496_v4 = vld [vmem:[%s2222_s4 + $0x10] ss:$8 sps:$4 sm:$0xff] (%p331_p11)   ;;  %v339_v14 = vld [vmem:[#allocation2 + $0x8] sm:$0xff] (%p331_p11) }
  0x88   : > { %566 = vmatprep.subr.bf16.mxu0 (%p331_p11), %v1491_v0  ;;  %v1497_v5 = vld [vmem:[%s2222_s4 + $0x24] ss:$8 sps:$4 sm:$0xff] (%p331_p11)   ;;  %v1499_v6 = vld [vmem:[%s2222_s4 + $0x20] ss:$8 sps:$4 sm:$0xff] (%p331_p11)   ;;  %v1500_v7 = vld [vmem:[%s2222_s4 + $0x34] ss:$8 sps:$4 sm:$0xff] (%p331_p11)   ;;  %v355_v16 = vpack.c.bf16 (%p331_p11), %v341_v15, %v339_v14 }
  0x89   : > { %567 = vmatpush1.bf16.msra.mxu0 (%p331_p11), %v1493_v1  ;;  %v1502_v8 = vld [vmem:[%s2222_s4 + $0x30] ss:$8 sps:$4 sm:$0xff] (%p331_p11)   ;;  %v1503_v9 = vld [vmem:[%s2222_s4 + $0x44] ss:$8 sps:$4 sm:$0xff] (%p331_p11)   ;;  %v1505_v10 = vld [vmem:[%s2222_s4 + $0x40] ss:$8 sps:$4 sm:$0xff] (%p331_p11)  }
  0x8a   : > { %568 = vmatprep.subr.bf16.mxu0 (%p331_p11), %v1494_v3  ;;  %v1506_v11 = vld [vmem:[%s2222_s4 + $0x54] ss:$8 sps:$4 sm:$0xff] (%p331_p11)   ;;  %v1508_v12 = vld [vmem:[%s2222_s4 + $0x50] ss:$8 sps:$4 sm:$0xff] (%p331_p11)   ;;  %v1509_v13 = vld [vmem:[%s2222_s4 + $0x64] ss:$8 sps:$4 sm:$0xff] (%p331_p11)   ;;  %598 = vmatprep.mubr.bf16.mxu0 (%p331_p11), %v355_v16 }
  0x8b   : > { %v1511_v17 = vld [vmem:[%s2222_s4 + $0x60] ss:$8 sps:$4 sm:$0xff] (%p331_p11)   ;;  %v1512_v18 = vld [vmem:[%s2222_s4 + $0x74] ss:$8 sps:$4 sm:$0xff] (%p331_p11)   ;;  %v1514_v20 = vld [vmem:[%s2222_s4 + $0x70] ss:$8 sps:$4 sm:$0xff] (%p331_p11)  }
  0x8c   : > { %v655_v19 = vld [vmem:[%s1889_s9] sm:$0xff] (%p331_p11)  ;;  %v656_v22 = vld [vmem:[%s1889_s9 + $0x8] sm:$0xff] (%p331_p11)  ;;  %v657_v23 = vld [vmem:[%s1889_s9 + $0x10] sm:$0xff] (%p331_p11)  ;;  %s1119_s29 = sshll.u32 (%p331_p11), %s1896_s22, 4  ;;  %s2255_s2 = sand.u32 (%p331_p11), 1, %s1721_s11   ;;  %s2171_s29 = int_to_ptr.vmem [resolvable:$true] %s1119_s29 }
  0x8d   : > { %569 = vmatpush1.bf16.msra.mxu0 (%p331_p11), %v1496_v4  ;;  %v663_v21 = vcvt.s32.f32 (%p331_p11), %v655_v19  ;;  %v1515_v24 = vld [vmem:[%s2222_s4 + $0x84] ss:$8 sps:$4 sm:$0xff] (%p331_p11)   ;;  %v665_v25 = vcvt.s32.f32 (%p331_p11), %v657_v23  ;;  %v658_v27 = vld [vmem:[%s1889_s9 + $0x18] sm:$0xff] (%p331_p11)  ;;  %v1517_v28 = vld [vmem:[%s2222_s4 + $0x80] ss:$8 sps:$4 sm:$0xff] (%p331_p11)   ;;  %v664_v29 = vcvt.s32.f32 (%p331_p11), %v656_v22  ;;  %s2177_s6 = scalar_lea.sflag (%p331_p11), [#allocation8], %s2255_s2 }
  0x8e   : > { %570 = vmatprep.subr.bf16.mxu0 %v1497_v5  ;;  %v659_v26 = vld [vmem:[%s1889_s9 + $0x20] sm:$0xff]  ;;  %v660_v30 = vld [vmem:[%s1889_s9 + $0x28] sm:$0xff]  ;;  %v1518_v31 = vld [vmem:[%s2222_s4 + $0x94] ss:$8 sps:$4 sm:$0xff]   ;;  %v666_v32 = vcvt.s32.f32 %v658_v27  ;;  %p2256_p1 = scmp.ne.s32.totalorder %s2243_s19, 0  ;;  %s1747_s10 = smov [#allocation9]  }
  0x8f   : > { %673 = vperm.xlu0 %1489, %v663_v21   ;;  %683 = vperm.xlu1 %1490, %v665_v25   ;;  %v1989_v33 = vld [vmem:[#allocation6 + $0x40] sm:$0xff]   ;;  %v661_v35 = vld [vmem:[%s1889_s9 + $0x30] sm:$0xff]  ;;  %v1995_v36 = vld [vmem:[#allocation6 + $0x48] sm:$0xff]   ;;  %v667_v38 = vcvt.s32.f32 %v659_v26  ;;  %v668_v40 = vcvt.s32.f32 %v660_v30  ;;  %s1655_s0 = sshll.u32 %s1747_s10, 4  ;;  %s1656_s0 = int_to_ptr.vmem [resolvable:$false] %s1655_s0 }
  0x90   : > { %v1991_v34 = vld [vmem:[#allocation6] sm:$0xff]   ;;  %1335 = vmatprep.subr.bf16.mxu1 %v1989_v33  ;;  %v1520_v37 = vld [vmem:[%s2222_s4 + $0x90] ss:$8 sps:$4 sm:$0xff]   ;;  %v2001_v39 = vld [vmem:[#allocation6 + $0x8] sm:$0xff]   ;;  %v669_v44 = vcvt.s32.f32 %v661_v35  ;;  %s1657_s15 = scalar_lea.vmem %s1656_s0, 2048  ;;  %p1658_p8 = scmp.lt.s32.totalorder %s2171_s29, %s1656_s0 }
  0x91   : > { %571 = vmatpush1.bf16.msra.mxu0 %v1499_v6  ;;  %1336 = vmatpush3.bf16.msra.mxu1 %v1991_v34  ;;  %v2004_v41 = vld [vmem:[#allocation6 + $0x50] sm:$0xff]   ;;  %v662_v42 = vld [vmem:[%s1889_s9 + $0x38] sm:$0xff]  ;;  %v1521_v43 = vld [vmem:[%s2222_s4 + $0xa4] ss:$8 sps:$4 sm:$0xff]  }
  0x92   : > { %572 = vmatprep.subr.bf16.mxu0 %v1500_v7  ;;  %1337 = vmatprep.subr.bf16.mxu1 %v1995_v36  ;;  %v2011_v45 = vld [vmem:[#allocation6 + $0x10] sm:$0xff]   ;;  %v670_v46 = vcvt.s32.f32 %v662_v42  ;;  %v2014_v47 = vld [vmem:[#allocation6 + $0x58] sm:$0xff]   ;;  %v1523_v48 = vld [vmem:[%s2222_s4 + $0xa0] ss:$8 sps:$4 sm:$0xff]  }
  0x93   : > { %678 = vperm.xlu0 %1489, %v664_v29   ;;  %688 = vperm.xlu1 %1490, %v666_v32   ;;  %v1524_v49 = vld [vmem:[%s2222_s4 + $0xb4] ss:$8 sps:$4 sm:$0xff]   ;;  %v2026_v51 = vld [vmem:[#allocation6 + $0x60] sm:$0xff]   ;;  %v1526_v52 = vld [vmem:[%s2222_s4 + $0xb0] ss:$8 sps:$4 sm:$0xff]  }
  0x94   : > { %v2023_v50 = vld [vmem:[#allocation6 + $0x18] sm:$0xff]   ;;  %v1527_v53 = vld [vmem:[%s2222_s4 + $0xc4] ss:$8 sps:$4 sm:$0xff]   ;;  %v1529_v59 = vld [vmem:[%s2222_s4 + $0xc0] ss:$8 sps:$4 sm:$0xff]  }
  0x95   : > { %573 = vmatpush1.bf16.msra.mxu0 %v1502_v8  ;;  %1338 = vmatpush3.bf16.msra.mxu1 %v2001_v39  ;;  %v2035_v54 = vld [vmem:[#allocation6 + $0x20] sm:$0xff]   ;;  %v761_v55 = vld [vmem:[%s1894_s17 + $0x8] sm:$0xff]  ;;  %v763_v56 = vld [vmem:[%s1894_s17 + $0x18] sm:$0xff] }
  0x96   : > { %574 = vmatprep.subr.bf16.mxu0 %v1503_v9  ;;  %1339 = vmatprep.subr.bf16.mxu1 %v2004_v41  ;;  %v2040_v57 = vld [vmem:[#allocation6 + $0x68] sm:$0xff]   ;;  %v777_v58 = vpack.c.bf16 %v763_v56, %v761_v55  ;;  %v1530_v60 = vld [vmem:[%s2222_s4 + $0xd4] ss:$8 sps:$4 sm:$0xff]   ;;  %v1532_v63 = vld [vmem:[%s2222_s4 + $0xd0] ss:$8 sps:$4 sm:$0xff]  }
  0x97   : > { %693 = vperm.xlu0 %1489, %v667_v38   ;;  %698 = vperm.xlu1 %1490, %v668_v40   ;;  %v2049_v61 = vld [vmem:[#allocation6 + $0x28] sm:$0xff]   ;;  %v2052_v62 = vld [vmem:[#allocation6 + $0x70] sm:$0xff]   ;;  %v2064_v2 = vld [vmem:[#allocation6 + $0x78] sm:$0xff]  }
  0x98   : > { %918 = vmatprep.mubr.bf16.mxu1 %v777_v58  ;;  %v1533_v0 = vld [vmem:[%s2222_s4 + $0xe4] ss:$8 sps:$4 sm:$0xff]   ;;  %v2061_v1 = vld [vmem:[#allocation6 + $0x30] sm:$0xff]   ;;  %v1535_v3 = vld [vmem:[%s2222_s4 + $0xe0] ss:$8 sps:$4 sm:$0xff]  }
  0x99   : > { %575 = vmatpush1.bf16.msra.mxu0 %v1505_v10  ;;  %1340 = vmatpush3.bf16.msra.mxu1 %v2011_v45  ;;  %v1536_v4 = vld [vmem:[%s2222_s4 + $0xf4] ss:$8 sps:$4 sm:$0xff]   ;;  %v760_v6 = vld [vmem:[%s1894_s17] sm:$0xff]  ;;  %v765_v8 = vld [vmem:[%s1894_s17 + $0x28] sm:$0xff] }
  0x9a   : > { %576 = vmatprep.subr.bf16.mxu0 %v1506_v11  ;;  %1341 = vmatprep.subr.bf16.mxu1 %v2014_v47  ;;  %v1554_v5 = vld [vmem:[#allocation6 + $0x38] sm:$0xff]   ;;  %v762_v7 = vld [vmem:[%s1894_s17 + $0x10] sm:$0xff]  ;;  %v338_v11 = vld [vmem:[#allocation2] sm:$0xff] }
  0x9b   : > { %703 = vperm.xlu0 %1489, %v669_v44   ;;  %708 = vperm.xlu1 %1490, %v670_v46   ;;  %v767_v9 = vld [vmem:[%s1894_s17 + $0x38] sm:$0xff]  ;;  %v776_v15 = vpack.c.bf16 %v762_v7, %v760_v6  ;;  %v764_v19 = vld [vmem:[%s1894_s17 + $0x20] sm:$0xff]  ;;  %v344_v22 = vld [vmem:[#allocation2 + $0x30] sm:$0xff] }
  0x9c   : > { %v1538_v10 = vld [vmem:[%s2222_s4 + $0xf0] ss:$8 sps:$4 sm:$0xff]   ;;  %v779_v16 = vpack.c.bf16 %v767_v9, %v765_v8  ;;  %v342_v21 = vld [vmem:[#allocation2 + $0x20] sm:$0xff]  ;;  %v347_v23 = vld [vmem:[#allocation2 + $0x48] sm:$0xff] }
  0x9d   : > { %577 = vmatpush1.bf16.msra.mxu0 %v1508_v12  ;;  %1342 = vmatpush3.bf16.msra.mxu1 %v2023_v50  ;;  %v340_v12 = vld [vmem:[#allocation2 + $0x10] sm:$0xff]  ;;  %v345_v14 = vld [vmem:[#allocation2 + $0x38] sm:$0xff]  ;;  %v356_v26 = vpack.c.bf16 %v344_v22, %v342_v21  ;;  %v351_v30 = vld [vmem:[#allocation2 + $0x68] sm:$0xff] }
  0x9e   : > { %578 = vmatprep.subr.bf16.mxu0 %v1509_v13  ;;  %1343 = vmatprep.subr.bf16.mxu1 %v2026_v51  ;;  %v343_v13 = vld [vmem:[#allocation2 + $0x28] sm:$0xff]  ;;  %v348_v29 = vld [vmem:[#allocation2 + $0x50] sm:$0xff]  ;;  %v771_v38 = vld [vmem:[%s1894_s17 + $0x58] sm:$0xff] }
  0x9f   : > { %v352_v35 = vld [vmem:[#allocation2 + $0x70] sm:$0xff]  ;;  %v768_v40 = vld [vmem:[%s1894_s17 + $0x40] sm:$0xff]  ;;  %v775_v44 = vld [vmem:[%s1894_s17 + $0x78] sm:$0xff] }
  0xa0   : > { %v772_v46 = vld [vmem:[%s1894_s17 + $0x60] sm:$0xff] }
  0xa1   : > { %579 = vmatpush1.bf16.msra.mxu0 %v1511_v17  ;;  %1344 = vmatpush3.bf16.msra.mxu1 %v2035_v54  ;;  %v354_v17 = vpack.c.bf16 %v340_v12, %v338_v11 }
  0xa2   : > { %580 = vmatprep.subr.bf16.mxu0 %v1512_v18  ;;  %1345 = vmatprep.subr.bf16.mxu1 %v2040_v57  ;;  %v357_v18 = vpack.c.bf16 %v345_v14, %v343_v13 }
  0xa5   : > { %581 = vmatpush1.bf16.msra.mxu0 %v1514_v20  ;;  %1346 = vmatpush3.bf16.msra.mxu1 %v2049_v61  ;;  %v766_v20 = vld [vmem:[%s1894_s17 + $0x30] sm:$0xff] }
  0xa6   : > { %582 = vmatprep.subr.bf16.mxu0 %v1515_v24  ;;  %1347 = vmatprep.subr.bf16.mxu1 %v2052_v62  ;;  %v349_v24 = vld [vmem:[#allocation2 + $0x58] sm:$0xff]  ;;  %v778_v25 = vpack.c.bf16 %v766_v20, %v764_v19 }
  0xa7   : > { %v359_v27 = vpack.c.bf16 %v349_v24, %v347_v23 }
  0xa9   : > { %583 = vmatpush1.bf16.msra.mxu0 %v1517_v28  ;;  %1348 = vmatpush3.bf16.msra.mxu1 %v2061_v1  ;;  %v346_v28 = vld [vmem:[#allocation2 + $0x40] sm:$0xff] }
  0xaa   : > { %584 = vmatprep.subr.bf16.mxu0 %v1518_v31  ;;  %1349 = vmatprep.subr.bf16.mxu1 %v2064_v2  ;;  %v353_v31 = vld [vmem:[#allocation2 + $0x78] sm:$0xff]  ;;  %v358_v32 = vpack.c.bf16 %v348_v29, %v346_v28 }
  0xad   : > { %585 = vmatpush1.bf16.msra.mxu0 %v1520_v37  ;;  %1350 = vmatpush3.bf16.msra.mxu1 %v1554_v5  ;;  %v769_v37 = vld [vmem:[%s1894_s17 + $0x48] sm:$0xff] }
  0xae   : > { %586 = vmatprep.subr.bf16.mxu0 %v1521_v43  ;;  %1375 = vmatprep.subr.bf16.mxu1 %v1989_v33  ;;  %v361_v33 = vpack.c.bf16 %v353_v31, %v351_v30  ;;  %v773_v43 = vld [vmem:[%s1894_s17 + $0x68] sm:$0xff] }
  0xb0   : > { %919 = vmatmul.mubr.bf16.vlgmr.msra.gmra.mrb[0].mxu1 %v776_v15 }
  0xb1   : > { %587 = vmatpush1.bf16.msra.mxu0 %v1523_v48  ;;  %1376 = vmatpush3.bf16.msra.mxu1 %v1991_v34  ;;  %v350_v34 = vld [vmem:[#allocation2 + $0x60] sm:$0xff] }
  0xb2   : > { %588 = vmatprep.subr.bf16.mxu0 %v1524_v49  ;;  %926 = vmatprep.mubr.bf16.mxu1 %v779_v16  ;;  %v396_v49 = vlaneseq }
  0xb3   : > { %1377 = vmatprep.subr.bf16.mxu1 %v1995_v36  ;;  %v360_v36 = vpack.c.bf16 %v352_v35, %v350_v34 }
  0xb5   : > { %589 = vmatpush1.bf16.msra.mxu0 %v1526_v52  ;;  %1378 = vmatpush3.bf16.msra.mxu1 %v2001_v39  ;;  %v781_v39 = vpack.c.bf16 %v771_v38, %v769_v37  ;;  %v394_v52 = vld [vmem:[%s2223_s5] sm:$0x3] }
  0xb6   : > { %590 = vmatprep.subr.bf16.mxu0 %v1527_v53  ;;  %1379 = vmatprep.subr.bf16.mxu1 %v2004_v41  ;;  %v770_v41 = vld [vmem:[%s1894_s17 + $0x50] sm:$0xff] }
  0xb7   : > { %v780_v42 = vpack.c.bf16 %v770_v41, %v768_v40 }
  0xb8   : > { %927 = vmatmul.mubr.bf16.gmra.mrb[4].mxu1 %v778_v25 }
  0xb9   : > { %591 = vmatpush1.bf16.msra.mxu0 %v1529_v59  ;;  %1380 = vmatpush3.bf16.msra.mxu1 %v2011_v45  ;;  %v783_v45 = vpack.c.bf16 %v775_v44, %v773_v43 }
  0xba   : > { %592 = vmatprep.subr.bf16.mxu0 %v1530_v60  ;;  %1381 = vmatprep.subr.bf16.mxu1 %v2014_v47  ;;  %v774_v47 = vld [vmem:[%s1894_s17 + $0x70] sm:$0xff]  ;;  %s1334_s17 = sshll.u32 %s1819_s13, 10  ;;  %s1651_s13 = scalar_lea.vmem %s2171_s29, 1024 }
  0xbb   : > { %934 = vmatprep.mubr.bf16.mxu1 %v781_v39  ;;  %v782_v48 = vpack.c.bf16 %v774_v47, %v772_v46  ;;  %s2169_s1 = scalar_lea.hbm %s2226_s8, %s1334_s17  ;;  %p1652_p0 = scmp.ne.s32.totalorder %s2171_s29, %s1651_s13 }
  0xbc   : > { %p1659_p9 = scmp.lt.s32.totalorder %s1657_s15, %s1651_s13 }
  0xbd   : > { %593 = vmatpush1.bf16.msra.mxu0 %v1532_v63  ;;  %1382 = vmatpush3.bf16.msra.mxu1 %v2023_v50  ;;  %v397_v50 = vshrl.u32 %v396_v49, 7  ;;  %p1653_p3 = pnand %p1652_p0, %p2256_p1 }
  0xbe   : > { %594 = vmatprep.subr.bf16.mxu0 %v1533_v0  ;;  %1383 = vmatprep.subr.bf16.mxu1 %v2026_v51  ;;  %p1660_p12 = por %p1659_p9, %p1658_p8 }
  0xbf   : > { %v398_v51 = vsub.s32 0, %v397_v50  ;;  %v402_v53 = vsub.s32 1, %v397_v50  ;;  %p1654_p7 = pneg %p1653_p3 }
  0xc0   : > { %935 = vmatmul.mubr.bf16.gmra.mrb[8].mxu1 %v780_v42 }
  0xc1   : > { %595 = vmatpush1.bf16.msra.mxu0 %v1535_v3  ;;  %1384 = vmatpush3.bf16.msra.mxu1 %v2035_v54  ;;  %v2109_v54 = vrot.slane %v394_v52, %v398_v51  ;;  %v2111_v55 = vrot.slane %v394_v52, %v402_v53  ;;  %p1661_p13 = pnand %p1660_p12, %p1654_p7 }
  0xc2   : > { %596 = vmatprep.subr.bf16.mxu0 %v1536_v4  ;;  %1385 = vmatprep.subr.bf16.mxu1 %v2040_v57  ;;  %v2116_v57 = vld [vmem:[%s2225_s7] ss:$0 sm:$0xff] }
  0xc3   : > { %942 = vmatprep.mubr.bf16.mxu1 %v783_v45 }
  0xc5   : > { %597 = vmatpush1.bf16.msra.mxu0 %v1538_v10  ;;  %1386 = vmatpush3.bf16.msra.mxu1 %v2049_v61 }
  0xc6   : > { %1387 = vmatprep.subr.bf16.mxu1 %v2052_v62 }
  0xc8   : > { %599 = vmatmul.mubr.bf16.vlgmr.msra.gmra.mrb[0].mxu0 %v354_v17  ;;  %943 = vmatmul.mubr.bf16.gmra.mrb[12].mxu1 %v782_v48 }
  0xc9   : > { %608 = vmatprep.mubr.bf16.mxu0 %v357_v18  ;;  %1388 = vmatpush3.bf16.msra.mxu1 %v2061_v1 }
  0xca   : > { %1389 = vmatprep.subr.bf16.mxu1 %v2064_v2 }
  0xcd   : > { %1390 = vmatpush3.bf16.msra.mxu1 %v1554_v5 }
  0xd0   : > { %609 = vmatmul.mubr.bf16.gmra.mrb[4].mxu0 %v356_v26 }
  0xd1   : > { %618 = vmatprep.mubr.bf16.mxu0 %v359_v27 }
  0xd8   : > { %619 = vmatmul.mubr.bf16.gmra.mrb[8].mxu0 %v358_v32 }
  0xd9   : > { %628 = vmatprep.mubr.bf16.mxu0 %v361_v33 }
  0xe0   : > { %629 = vmatmul.mubr.bf16.gmra.mrb[12].mxu0 %v360_v36 }
 0x10e   : > { %v674_v12 = vpop.permute.xlu0 %673  ;;  %v684_v40 = vpop.permute.xlu1 %683 }
 0x112   : > { %v679_v33 = vpop.permute.xlu0 %678  ;;  %v689_v53 = vpop.permute.xlu1 %688 }
 0x183   : > { %v1351_v56 = vpop.f32.mrb[0].mxu1 }
 0x184   : > { %v1352_v58 = vpop.f32.mrb[1].mxu1 }
 0x185   : > { %v1353_v60 = vadd.f32 %v1352_v58, %v1351_v56  ;;  %v1354_v61 = vpop.f32.mrb[2].mxu1 }
 0x186   : > { %v1355_v0 = vpop.f32.mrb[3].mxu1 }
 0x187   : > { %v921_v3 = vadd.f32 %v1353_v60, %v2116_v57  ;;  %v1356_v4 = vadd.f32 %v1355_v0, %v1354_v61 }
 0x189   : > { %v1317_v8 = vpack.c.bf16 %v921_v3, %v921_v3  ;;  %v924_v9 = vadd.f32 %v1356_v4, %v2116_v57 }
 0x18b   : > { %1056 = vst [vmem:[%s1896_s22] sm:$0xf] %v1317_v8  ;;  %v1318_v10 = vpack.c.bf16 %v924_v9, %v924_v9  ;;  %v1357_v11 = vpop.f32.mrb[4].mxu1 }
 0x18c   : > { %v1358_v13 = vpop.f32.mrb[5].mxu1 }
 0x18d   : > { %1057 = vst [vmem:[%s1896_s22 + $0x8] sm:$0xf] %v1318_v10  ;;  %v1359_v15 = vadd.f32 %v1358_v13, %v1357_v11  ;;  %v1360_v16 = vpop.f32.mrb[6].mxu1  ;;  %v694_v11 = vpop.permute.xlu0 %693 }
 0x18e   : > { %v1361_v19 = vpop.f32.mrb[7].mxu1 }
 0x18f   : > { %v929_v22 = vadd.f32 %v1359_v15, %v2116_v57  ;;  %v1362_v23 = vadd.f32 %v1361_v19, %v1360_v16 }
 0x191   : > { %v1319_v27 = vpack.c.bf16 %v929_v22, %v929_v22  ;;  %v932_v28 = vadd.f32 %v1362_v23, %v2116_v57 }
 0x193   : > { %1058 = vst [vmem:[%s1896_s22 + $0x10] sm:$0xf] %v1319_v27  ;;  %v1320_v31 = vpack.c.bf16 %v932_v28, %v932_v28 }
 0x195   : > { %1059 = vst [vmem:[%s1896_s22 + $0x18] sm:$0xf] %v1320_v31 }
 0x19b   : > { %v600_v59 = vpop.f32.mrb[0].mxu0 }
 0x19c   : > { %v601_v62 = vadd.f32 %v600_v59, %v2109_v54  ;;  %v602_v63 = vpop.f32.mrb[1].mxu0 }
 0x19d   : > { %v603_v1 = vadd.f32 %v602_v63, %v2111_v55  ;;  %v604_v2 = vpop.f32.mrb[2].mxu0 }
 0x19e   : > { %1555 = vtanh.f32 %v601_v62  ;;  %v605_v5 = vadd.f32 %v604_v2, %v2109_v54  ;;  %v606_v6 = vpop.f32.mrb[3].mxu0 }
 0x19f   : > { %1557 = vtanh.f32 %v603_v1  ;;  %v607_v7 = vadd.f32 %v606_v6, %v2111_v55 }
 0x1a0   : > { %1559 = vtanh.f32 %v605_v5 }
 0x1a1   : > { %1561 = vtanh.f32 %v607_v7 }
 0x1a3   : > { %v610_v14 = vpop.f32.mrb[4].mxu0 }
 0x1a4   : > { %v611_v17 = vadd.f32 %v610_v14, %v2109_v54  ;;  %v612_v18 = vpop.f32.mrb[5].mxu0 }
 0x1a5   : > { %v613_v20 = vadd.f32 %v612_v18, %v2111_v55  ;;  %v614_v21 = vpop.f32.mrb[6].mxu0 }
 0x1a6   : > { %1563 = vtanh.f32 %v611_v17  ;;  %v615_v24 = vadd.f32 %v614_v21, %v2109_v54  ;;  %v616_v25 = vpop.f32.mrb[7].mxu0  ;;  %v704_v21 = vpop.permute.xlu0 %703 }
 0x1a7   : > { %1565 = vtanh.f32 %v613_v20  ;;  %v617_v26 = vadd.f32 %v616_v25, %v2111_v55 }
 0x1a8   : > { %v1556_v29 = vpop.eup %1555  ;;  %1567 = vtanh.f32 %v615_v24 }
 0x1a9   : > { %v1558_v30 = vpop.eup %1557  ;;  %1569 = vtanh.f32 %v617_v26  ;;  %v711_v35 = vmul.f32 %v1556_v29, %v674_v12 }
 0x1aa   : > { %v1560_v32 = vpop.eup %1559  ;;  %v712_v38 = vmul.f32 %v1558_v30, %v674_v12  ;;  %v699_v12 = vpop.permute.xlu1 %698 }
 0x1ab   : > { %v1562_v34 = vpop.eup %1561  ;;  %v713_v36 = vmul.f32 %v1560_v32, %v679_v33  ;;  %v620_v37 = vpop.f32.mrb[8].mxu0 }
 0x1ac   : > { %v714_v39 = vmul.f32 %v1562_v34, %v679_v33  ;;  %v621_v41 = vadd.f32 %v620_v37, %v2109_v54  ;;  %v622_v42 = vpop.f32.mrb[9].mxu0  ;;  %v1363_v30 = vpop.f32.mrb[8].mxu1 }
 0x1ad   : > { %v951_v43 = vpack.c.bf16 %v713_v36, %v711_v35  ;;  %v623_v44 = vadd.f32 %v622_v42, %v2111_v55  ;;  %v624_v45 = vpop.f32.mrb[10].mxu0  ;;  %v1364_v31 = vpop.f32.mrb[9].mxu1 }
 0x1ae   : > { %v952_v46 = vpack.c.bf16 %v714_v39, %v712_v38  ;;  %1571 = vtanh.f32 %v621_v41  ;;  %v625_v47 = vadd.f32 %v624_v45, %v2109_v54  ;;  %v626_v48 = vpop.f32.mrb[11].mxu0  ;;  %v709_v22 = vpop.permute.xlu1 %708  ;;  %v1365_v32 = vadd.f32 %v1364_v31, %v1363_v30 }
 0x1af   : > { %1573 = vtanh.f32 %v623_v44  ;;  %v627_v49 = vadd.f32 %v626_v48, %v2111_v55  ;;  %v1366_v33 = vpop.f32.mrb[10].mxu1 }
 0x1b0   : > { %v1564_v50 = vpop.eup %1563  ;;  %1575 = vtanh.f32 %v625_v47  ;;  %991 = vmatprep.mubr.bf16.mxu1 %v952_v46  ;;  %v1367_v34 = vpop.f32.mrb[11].mxu1  ;;  %v937_v35 = vadd.f32 %v1365_v32, %v2116_v57 }
 0x1b1   : > { %v1566_v51 = vpop.eup %1565  ;;  %1577 = vtanh.f32 %v627_v49  ;;  %992 = vmatmul.mubr.bf16.vlgmr.msra.gmra.mrb[16].mxu1 %v951_v43  ;;  %v715_v58 = vmul.f32 %v1564_v50, %v684_v40  ;;  %v1368_v36 = vadd.f32 %v1367_v34, %v1366_v33 }
 0x1b2   : > { %v1568_v52 = vpop.eup %1567  ;;  %v716_v61 = vmul.f32 %v1566_v51, %v684_v40  ;;  %v1321_v37 = vpack.c.bf16 %v937_v35, %v937_v35  ;;  %v1369_v40 = vpop.f32.mrb[12].mxu1 }
 0x1b3   : > { %v1570_v56 = vpop.eup %1569  ;;  %v717_v59 = vmul.f32 %v1568_v52, %v689_v53  ;;  %v630_v60 = vpop.f32.mrb[12].mxu0  ;;  %v940_v38 = vadd.f32 %v1368_v36, %v2116_v57 }
 0x1b4   : > { %v718_v62 = vmul.f32 %v1570_v56, %v689_v53  ;;  %v631_v63 = vadd.f32 %v630_v60, %v2109_v54  ;;  %v632_v0 = vpop.f32.mrb[13].mxu0  ;;  %1060 = vst [vmem:[%s1896_s22 + $0x20] sm:$0xf] %v1321_v37  ;;  %v1370_v41 = vpop.f32.mrb[13].mxu1 }
 0x1b5   : > { %v953_v1 = vpack.c.bf16 %v717_v59, %v715_v58  ;;  %v633_v2 = vadd.f32 %v632_v0, %v2111_v55  ;;  %v634_v3 = vpop.f32.mrb[14].mxu0  ;;  %v1322_v39 = vpack.c.bf16 %v940_v38, %v940_v38  ;;  %v1371_v42 = vadd.f32 %v1370_v41, %v1369_v40  ;;  %v1372_v43 = vpop.f32.mrb[14].mxu1 }
 0x1b6   : > { %v954_v4 = vpack.c.bf16 %v718_v62, %v716_v61  ;;  %1579 = vtanh.f32 %v631_v63  ;;  %v635_v5 = vadd.f32 %v634_v3, %v2109_v54  ;;  %v636_v6 = vpop.f32.mrb[15].mxu0  ;;  %v1373_v44 = vpop.f32.mrb[15].mxu1 }
 0x1b7   : > { %1581 = vtanh.f32 %v633_v2  ;;  %v637_v7 = vadd.f32 %v636_v6, %v2111_v55  ;;  %1061 = vst [vmem:[%s1896_s22 + $0x28] sm:$0xf] %v1322_v39  ;;  %v945_v45 = vadd.f32 %v1371_v42, %v2116_v57  ;;  %v1374_v46 = vadd.f32 %v1373_v44, %v1372_v43 }
 0x1b8   : > { %v1572_v8 = vpop.eup %1571  ;;  %1583 = vtanh.f32 %v635_v5  ;;  %999 = vmatprep.mubr.bf16.mxu1 %v954_v4 }
 0x1b9   : > { %v1574_v9 = vpop.eup %1573  ;;  %1585 = vtanh.f32 %v637_v7  ;;  %1000 = vmatmul.mubr.bf16.gmra.mrb[20].mxu1 %v953_v1  ;;  %v719_v14 = vmul.f32 %v1572_v8, %v694_v11  ;;  %v1323_v47 = vpack.c.bf16 %v945_v45, %v945_v45  ;;  %v948_v48 = vadd.f32 %v1374_v46, %v2116_v57 }
 0x1ba   : > { %v1576_v10 = vpop.eup %1575  ;;  %v720_v16 = vmul.f32 %v1574_v9, %v694_v11 }
 0x1bb   : > { %v1578_v13 = vpop.eup %1577  ;;  %v721_v15 = vmul.f32 %v1576_v10, %v699_v12  ;;  %1062 = vst [vmem:[%s1896_s22 + $0x30] sm:$0xf] %v1323_v47  ;;  %v1324_v49 = vpack.c.bf16 %v948_v48, %v948_v48 }
 0x1bc   : > { %v722_v17 = vmul.f32 %v1578_v13, %v699_v12 }
 0x1bd   : > { %v955_v18 = vpack.c.bf16 %v721_v15, %v719_v14  ;;  %1063 = vst [vmem:[%s1896_s22 + $0x38] sm:$0xf] %v1324_v49 }
 0x1be   : > { %v956_v54 = vpack.c.bf16 %v722_v17, %v720_v16 }
 0x1c0   : > { %v1580_v19 = vpop.eup %1579  ;;  %1007 = vmatprep.mubr.bf16.mxu1 %v956_v54 }
 0x1c1   : > { %v1582_v20 = vpop.eup %1581  ;;  %1008 = vmatmul.mubr.bf16.gmra.mrb[24].mxu1 %v955_v18  ;;  %v723_v24 = vmul.f32 %v1580_v19, %v704_v21 }
 0x1c2   : > { %v1584_v55 = vpop.eup %1583  ;;  %v724_v26 = vmul.f32 %v1582_v20, %v704_v21 }
 0x1c3   : > { %v1586_v23 = vpop.eup %1585  ;;  %v725_v25 = vmul.f32 %v1584_v55, %v709_v22 }
 0x1c4   : > { %v726_v27 = vmul.f32 %v1586_v23, %v709_v22 }
 0x1c5   : > { %v957_v28 = vpack.c.bf16 %v725_v25, %v723_v24 }
 0x1c6   : > { %v958_v29 = vpack.c.bf16 %v726_v27, %v724_v26 }
 0x1c8   : > { %1015 = vmatprep.mubr.bf16.mxu1 %v958_v29 }
 0x1c9   : > { %1016 = vmatmul.mubr.bf16.gmra.mrb[28].mxu1 %v957_v28 }
 0x284   : > { %v1391_v50 = vpop.f32.mrb[16].mxu1 }
 0x285   : > { %v1392_v51 = vpop.f32.mrb[17].mxu1 }
 0x286   : > { %v1393_v52 = vadd.f32 %v1392_v51, %v1391_v50  ;;  %v1394_v53 = vpop.f32.mrb[18].mxu1 }
 0x287   : > { %v1395_v56 = vpop.f32.mrb[19].mxu1 }
 0x288   : > { %v994_v58 = vadd.f32 %v1393_v52, %v2116_v57  ;;  %v1396_v59 = vadd.f32 %v1395_v56, %v1394_v53 }
 0x28a   : > { %v1325_v60 = vpack.c.bf16 %v994_v58, %v994_v58  ;;  %v997_v61 = vadd.f32 %v1396_v59, %v2116_v57 }
 0x28c   : > { %1096 = vst [vmem:[%s1896_s22 + $0x4] sm:$0xf] %v1325_v60  ;;  %v1326_v62 = vpack.c.bf16 %v997_v61, %v997_v61  ;;  %v1397_v63 = vpop.f32.mrb[20].mxu1 }
 0x28d   : > { %v1398_v0 = vpop.f32.mrb[21].mxu1 }
 0x28e   : > { %1097 = vst [vmem:[%s1896_s22 + $0xc] sm:$0xf] %v1326_v62  ;;  %v1399_v1 = vadd.f32 %v1398_v0, %v1397_v63  ;;  %v1400_v2 = vpop.f32.mrb[22].mxu1 }
 0x28f   : > { %v1401_v3 = vpop.f32.mrb[23].mxu1 }
 0x290   : > { %v1002_v4 = vadd.f32 %v1399_v1, %v2116_v57  ;;  %v1402_v5 = vadd.f32 %v1401_v3, %v1400_v2 }
 0x292   : > { %v1327_v6 = vpack.c.bf16 %v1002_v4, %v1002_v4  ;;  %v1005_v7 = vadd.f32 %v1402_v5, %v2116_v57 }
 0x294   : > { %1098 = vst [vmem:[%s1896_s22 + $0x14] sm:$0xf] %v1327_v6  ;;  %v1328_v8 = vpack.c.bf16 %v1005_v7, %v1005_v7  ;;  %v1403_v9 = vpop.f32.mrb[24].mxu1 }
 0x295   : > { %v1404_v10 = vpop.f32.mrb[25].mxu1 }
 0x296   : > { %1099 = vst [vmem:[%s1896_s22 + $0x1c] sm:$0xf] %v1328_v8  ;;  %v1405_v11 = vadd.f32 %v1404_v10, %v1403_v9  ;;  %v1406_v12 = vpop.f32.mrb[26].mxu1 }
 0x297   : > { %v1407_v13 = vpop.f32.mrb[27].mxu1 }
 0x298   : > { %v1010_v14 = vadd.f32 %v1405_v11, %v2116_v57  ;;  %v1408_v15 = vadd.f32 %v1407_v13, %v1406_v12 }
 0x29a   : > { %v1329_v16 = vpack.c.bf16 %v1010_v14, %v1010_v14  ;;  %v1013_v17 = vadd.f32 %v1408_v15, %v2116_v57 }
 0x29c   : > { %1100 = vst [vmem:[%s1896_s22 + $0x24] sm:$0xf] %v1329_v16  ;;  %v1330_v18 = vpack.c.bf16 %v1013_v17, %v1013_v17  ;;  %v1409_v54 = vpop.f32.mrb[28].mxu1 }
 0x29d   : > { %v1410_v19 = vpop.f32.mrb[29].mxu1 }
 0x29e   : > { %1101 = vst [vmem:[%s1896_s22 + $0x2c] sm:$0xf] %v1330_v18  ;;  %v1411_v20 = vadd.f32 %v1410_v19, %v1409_v54  ;;  %v1412_v55 = vpop.f32.mrb[30].mxu1 }
 0x29f   : > { %v1413_v21 = vpop.f32.mrb[31].mxu1 }
 0x2a0   : > { %v1018_v22 = vadd.f32 %v1411_v20, %v2116_v57  ;;  %v1414_v23 = vadd.f32 %v1413_v21, %v1412_v55 }
 0x2a2   : > { %v1331_v24 = vpack.c.bf16 %v1018_v22, %v1018_v22  ;;  %v1021_v25 = vadd.f32 %v1414_v23, %v2116_v57 }
 0x2a4   : > { %1102 = vst [vmem:[%s1896_s22 + $0x34] sm:$0xf] %v1331_v24  ;;  %v1332_v26 = vpack.c.bf16 %v1021_v25, %v1021_v25 }
 0x2a6   : > { %1103 = vst [vmem:[%s1896_s22 + $0x3c] sm:$0xf] %v1332_v26 }
 0x2a7   : > { %1664 = shalt.err (!%p1661_p13)
}
 0x2a8   : > { %s1665_s22 = scalar_lea.hbm %s2169_s1, 1024  ;;  %s1669_s26 = scalar_lea.hbm %s2226_s8, 4096 }
 0x2a9   : > { %p1666_p2 = scmp.ne.s32.totalorder %s2169_s1, %s1665_s22  ;;  %p1670_p5 = scmp.lt.u32.totalorder %s2169_s1, %s2226_s8 }
 0x2aa   : > { %p1671_p10 = scmp.lt.u32.totalorder %s1669_s26, %s1665_s22  ;;  %p1673_p0 = scmp.lt.u32.totalorder %s1665_s22, %s2169_s1 }
 0x2ab   : > { %p1667_p4 = pnand %p1666_p2, %p2256_p1 }
 0x2ac   : > { %p1672_p11 = por %p1671_p10, %p1670_p5 }
 0x2ad   : > { %p1668_p6 = pneg %p1667_p4 }
 0x2ae   : > { %p1674_p3 = por %p1673_p0, %p1672_p11 }
 0x2b0   : > { %p1675_p7 = pnand %p1674_p3, %p1668_p6 }
 0x2b2   : > { %1678 = shalt.err (!%p1675_p7)
}
 0x2b3   : > { %s1748_s25 = smov 128   ;;  %s1749_s9 = smov 8  }
 0x2b4   : > { %1419 = dma.vmem_to_hbm [thread:$0]  (%p2256_p1), %s2171_s29, 1024, %s2169_s1, %s2177_s6, %s1748_s25, %s1748_s25, %s1749_s9  }
 0x2b5 PF: > { %s2257_s30 = sld [smem:[#allocation15_spill]]  ;;  %s2258_s14 = sld [smem:[#allocation19_spill]] }
 0x2b6   : > { %p1431_p8 = scmp.ge.s32.totalorder %s1729_s12, 2 }
 0x2bb   : > { %s1134_s16 = sand.u32 1, %s2257_s30   ;;  %p2259_p9 = scmp.ne.s32.totalorder %s2258_s14, 0 }
 0x2bc   : > { %s1135_s23 = scalar_lea.sflag [#allocation8], %s1134_s16 }
 0x2bd   : > { %p1426_p12 = pnand %p1431_p8, %p2259_p9 }
 0x2bf   : > { %1712 = dma.done.wait (!%p1426_p12), %s1135_s23, 1024  }
 0x2c0   : > { %1714 = vsyncadd (!%p1426_p12), %s1135_s23, 4294966272  ;;  %s2260_s12 = sld [smem:[#allocation17_spill]]  ;;  %s2261_s17 = sld [smem:[#allocation16_spill]] }
 0x2c1   : > { %s2262_s0 = sld [smem:[#allocation18_spill]]  ;;  %s2263_s10 = smov %s1721_s11 }
 0x2c6   : > { %p25_p13 = scmp.ge.s32.totalorder %s2260_s12, 6   ;;  %s2264_s11 = smov %s2261_s17 }
 0x2c8   :  { %27 = sbr.rel (!%p25_p13) target bundleno = 20 (0x14), region = 125 }
 0x2cf   :  { %1140 = vsyncpa [#allocation7], 1 }
 0x2d0   :  { %1142 = vsyncpa [#allocation7 + $0x1], 1 }
 0x2d1   :  { %1143 = vsyncpa [#allocation8], 1 }
 0x2d2   :  { %1145 = vsyncpa [#allocation8 + $0x1], 1 }
 0x2d3   :  { %1146 = vsyncmov [#allocation3] }
 0x2d6   :  { %s1147_s19 = vpop.sfrf %1146 }
 0x2d7   :  { %p1315_p1 = scmp.ne.s32.totalorder %s1147_s19, 0 }
 0x2d9   :  { %1151 = shalt.err (%p1315_p1)  }

</bundles_post_ra>
